<compile_context>
chip_gen: v7x
topology: tpu7x:2x2x1
jax: 0.10.0
libtpu: 0.0.40
codegen_flags: <defaults>
</compile_context>

<pallas_src>
import functools
import math
import numpy as np
import jax
import jax.numpy as jnp
from jax import lax
from jax.experimental import pallas as pl
from jax.experimental.pallas import tpu as pltpu


# --------------------------------------------------------------------------
# Small helpers
# --------------------------------------------------------------------------
def _round_up(a, b):
    return (a + b - 1) // b * b


def _cdiv(a, b):
    return (a + b - 1) // b


def _vmem_budget_bytes():
    """(usable budget, physical capacity). Leaves headroom for compiler temps."""
    try:
        cap = pltpu.get_tpu_info().vmem_capacity_bytes
    except Exception:
        cap = 64 * 1024 * 1024      # conservative: v7x has 64 MiB per TC
    return int(cap * 0.70), cap


def _row_align(dtype):
    # sublane packing: f32 -> 8 rows/vreg, bf16 -> 16, int8/fp8 -> 32
    return max(8, 32 // jnp.dtype(dtype).itemsize)


def _largest_hidden_chunk(H, target):
    # th must obey the (8,128) layout rule (th == H or th % 128 == 0) and
    # divide H exactly so the hidden grid axis is exact.
    if H <= target:
        return H
    best = None
    d = 128
    while d <= min(H, target):
        if H % d == 0:
            best = d
        d += 128
    return best if best is not None else H


_SQRT_2_OVER_PI = math.sqrt(2.0 / math.pi)


def _gelu(x, approximate):
    if approximate:
        # tanh runs on the EUP slot (nearly free) vs. the long VPU polynomial
        # that lax.erf lowers to; enable when the small accuracy delta vs.
        # PyTorch's exact GELU is acceptable.
        return 0.5 * x * (1.0 + jnp.tanh(_SQRT_2_OVER_PI * (x + 0.044715 * x * x * x)))
    # PyTorch nn.GELU() default: exact erf-based GELU.
    return 0.5 * x * (1.0 + lax.erf(x * (1.0 / math.sqrt(2.0))))


# --------------------------------------------------------------------------
# Linear path kernels
# --------------------------------------------------------------------------
def _mlp_linear_resident_kernel(x_ref, w1_ref, b1_ref, w2_ref, b2_ref, o_ref,
                                *, approximate):
    # Weights fully resident in VMEM; one row tile per grid step.
    h = jnp.dot(x_ref[...], w1_ref[...], preferred_element_type=jnp.float32)
    h = _gelu(h + b1_ref[...], approximate)
    y = jnp.dot(h.astype(w2_ref.dtype), w2_ref[...],
                preferred_element_type=jnp.float32)
    o_ref[...] = (y + b2_ref[...]).astype(o_ref.dtype)


def _mlp_linear_chunked_kernel(x_ref, w1_ref, b1_ref, w2_ref, b2_ref, o_ref,
                               acc_ref, *, approximate):
    h_idx = pl.program_id(1)

    @pl.when(h_idx == 0)
    def _():
        acc_ref[...] = jnp.zeros_like(acc_ref)

    # Matmul operands stay in their native dtype (bf16 feeds the fast MXU
    # path); accumulation is f32 via preferred_element_type.
    h = jnp.dot(x_ref[...], w1_ref[...], preferred_element_type=jnp.float32)
    h = _gelu(h + b1_ref[...], approximate)
    acc_ref[...] += jnp.dot(h.astype(w2_ref.dtype), w2_ref[...],
                            preferred_element_type=jnp.float32)

    @pl.when(h_idx == pl.num_programs(1) - 1)
    def _():
        o_ref[...] = (acc_ref[...] + b2_ref[...]).astype(o_ref.dtype)


def mlp_linear(x, w1, b1, w2, b2, *, approximate_gelu=False,
               force_hidden_chunking=False, hidden_chunk_target=2048):
    """x: (B, N, C_in); w1: (C_in, H); b1: (1, H); w2: (H, C_out); b2: (1, C_out)."""
    B, N, C_in = x.shape
    H = w1.shape[1]
    C_out = w2.shape[1]
    M = B * N
    x2d = x.reshape(M, C_in)        # metadata-only reshape, no HBM copy

    db = jnp.dtype(x.dtype).itemsize
    wb = jnp.dtype(w1.dtype).itemsize
    align = _row_align(x.dtype)     # 16 for bf16, 8 for f32
    budget, cap = _vmem_budget_bytes()
    vmem_limit = min(int(cap * 0.9), 128 * 1024 * 1024)
    m_cap = _round_up(M, align)

    def pick_tm(fixed_bytes, per_row_bytes):
        for tm in (2048, 1024, 768, 512, 384, 256, 128, 64, 32, 16, 8):
            if tm % align:
                continue
            tm = min(tm, m_cap)
            if fixed_bytes + tm * per_row_bytes <= budget:
                # Keep >= 2 row tiles on big problems so ("parallel", ...)
                # can shard the row axis across both TensorCores on v7x.
                if M >= 1024 and _cdiv(M, tm) == 1:
                    tm = max(align, _round_up(_cdiv(M, 2), align))
                return tm
        return align

    cost = pl.CostEstimate(
        flops=2 * M * C_in * H + 2 * M * H * C_out,
        transcendentals=M * H,
        bytes_accessed=M * (C_in + C_out) * db + (C_in * H + H * C_out) * wb)

    # ---- weights-resident variant (weights read from HBM exactly once) ----
    fixed_res = 2 * (C_in * H + H * C_out + H + C_out) * wb
    per_row_res = 2 * C_in * db + 2 * C_out * db + H * (4 + db) + C_out * 4
    if not force_hidden_chunking and fixed_res <= budget // 2:
        tm = pick_tm(fixed_res, per_row_res)
        out2d = pl.pallas_call(
            functools.partial(_mlp_linear_resident_kernel,
                              approximate=approximate_gelu),
            out_shape=jax.ShapeDtypeStruct((M, C_out), x.dtype),
            grid_spec=pltpu.PrefetchScalarGridSpec(
                num_scalar_prefetch=0,
                grid=(_cdiv(M, tm),),
                in_specs=[
                    pl.BlockSpec((tm, C_in), lambda i: (i, 0)),
                    pl.BlockSpec((C_in, H), lambda i: (0, 0)),   # resident
                    pl.BlockSpec((1, H), lambda i: (0, 0)),
                    pl.BlockSpec((H, C_out), lambda i: (0, 0)),  # resident
                    pl.BlockSpec((1, C_out), lambda i: (0, 0)),
                ],
                out_specs=pl.BlockSpec((tm, C_out), lambda i: (i, 0)),
            ),
            compiler_params=pltpu.CompilerParams(
                dimension_semantics=("parallel",),
                vmem_limit_bytes=vmem_limit),
            cost_estimate=cost,
        )(x2d, w1, b1, w2, b2)
        return out2d.reshape(B, N, C_out)

    # ---- hidden-chunked variant (v7x 64 MiB VMEM, or huge weights) ----------
    th = H
    for target in (hidden_chunk_target, 1024, 512, 256, 128):
        th = _largest_hidden_chunk(H, target)
        if 2 * (C_in * th + th * C_out) * wb <= budget // 2:
            break
    # TODO(synk): hidden sizes with no divisor that is a multiple of 128 fall
    # back to th == H; tm shrinks to compensate but extreme cases may still spill.
    fixed_ch = 2 * (C_in * th + th * C_out + th + C_out) * wb
    per_row_ch = 2 * C_in * db + 2 * C_out * db + th * (4 + db) + C_out * 4
    tm = pick_tm(fixed_ch, per_row_ch)

    out2d = pl.pallas_call(
        functools.partial(_mlp_linear_chunked_kernel,
                          approximate=approximate_gelu),
        out_shape=jax.ShapeDtypeStruct((M, C_out), x.dtype),
        grid_spec=pltpu.PrefetchScalarGridSpec(
            num_scalar_prefetch=0,
            grid=(_cdiv(M, tm), H // th),
            in_specs=[
                pl.BlockSpec((tm, C_in), lambda i, h: (i, 0)),
                pl.BlockSpec((C_in, th), lambda i, h: (0, h)),
                pl.BlockSpec((1, th), lambda i, h: (0, h)),
                pl.BlockSpec((th, C_out), lambda i, h: (h, 0)),
                pl.BlockSpec((1, C_out), lambda i, h: (0, 0)),
            ],
            out_specs=pl.BlockSpec((tm, C_out), lambda i, h: (i, 0)),
            scratch_shapes=[pltpu.VMEM((tm, C_out), jnp.float32)],
        ),
        compiler_params=pltpu.CompilerParams(
            dimension_semantics=("parallel", "arbitrary"),
            vmem_limit_bytes=vmem_limit),
        cost_estimate=cost,
    )(x2d, w1, b1, w2, b2)
    return out2d.reshape(B, N, C_out)


# --------------------------------------------------------------------------
# Conv1d (k=3, padding='same') path
# --------------------------------------------------------------------------
def _conv_mlp_kernel(x_ref, w1_ref, b1_ref, w2_ref, b2_ref, o_ref,
                     x3_ref, acc_ref, *, approximate):
    h_idx = pl.program_id(1)
    tb, N, C_in = x_ref.shape
    th = w1_ref.shape[1]
    C_out = w2_ref.shape[2]

    def taps3(v):
        # v: (tb, N, C) -> (tb, N, 3*C) = [v[n-1] | v[n] | v[n+1]], zero-padded ends.
        z = jnp.zeros((v.shape[0], 1, v.shape[2]), v.dtype)
        v_prev = jnp.concatenate([z, v[:, :-1]], axis=1)
        v_next = jnp.concatenate([v[:, 1:], z], axis=1)
        return jnp.concatenate([v_prev, v, v_next], axis=-1)

    # Hoisted: the shifted-x concat is built once per batch tile and reused
    # for every hidden chunk (persistent VMEM scratch).
    @pl.when(h_idx == 0)
    def _():
        acc_ref[...] = jnp.zeros_like(acc_ref)
        x3_ref[...] = taps3(x_ref[...])

    # fc1: 3-tap conv fused into ONE matmul (contraction = 3*C_in).
    x3 = x3_ref[...].reshape(tb * N, 3 * C_in)
    h = jnp.dot(x3, w1_ref[...], preferred_element_type=jnp.float32) + b1_ref[...]
    h = _gelu(h, approximate).astype(w2_ref.dtype)

    # fc2: 3-tap conv on the hidden chunk, also fused into ONE matmul
    # (contraction = 3*th), accumulated across hidden chunks in f32.
    h3 = taps3(h.reshape(tb, N, th)).reshape(tb * N, 3 * th)
    acc_ref[...] += jnp.dot(h3, w2_ref[...].reshape(3 * th, C_out),
                            preferred_element_type=jnp.float32)

    @pl.when(h_idx == pl.num_programs(1) - 1)
    def _():
        y = acc_ref[...] + b2_ref[...]
        o_ref[...] = y.reshape(tb, N, C_out).astype(o_ref.dtype)


def mlp_conv1(x, w1, b1, w2, b2, *, approximate_gelu=False):
    """x: (B, N, C_in); w1: (3, C_in, H); b1: (1, H); w2: (3, H, C_out); b2: (1, C_out)."""
    B, N, C_in = x.shape
    H = w1.shape[2]
    C_out = w2.shape[2]

    db = jnp.dtype(x.dtype).itemsize
    wb = jnp.dtype(w1.dtype).itemsize
    budget, cap = _vmem_budget_bytes()
    vmem_limit = min(int(cap * 0.9), 128 * 1024 * 1024)

    # Hidden chunk: keep both conv weight tensors fully resident when they fit
    # (then they are read from HBM once, independent of B); else chunk over H.
    th = H
    for target in (H, 2048, 1024, 512, 256, 128):
        th = _largest_hidden_chunk(H, target)
        if 2 * 3 * (C_in * th + th * C_out) * wb <= budget // 2:
            break
    w_bytes = 2 * 3 * (C_in * th + th * C_out) * wb

    # Batch tile: several images per grid step so tb*N rows fill the MXU.
    def act_bytes(tb):
        rows = tb * N
        return (2 * rows * C_in * db        # x blocks (double-buffered)
                + rows * 3 * C_in * db      # x3 scratch (persistent)
                + 2 * rows * C_out * db     # out blocks (double-buffered)
                + rows * C_out * 4          # f32 accumulator
                + rows * th * (4 + db)      # h (f32) + cast copy
                + rows * 3 * th * db)       # h3 concat

    tb = 1
    for cand in range(B, 0, -1):
        if B % cand == 0 and cand * N <= 4096 and w_bytes + act_bytes(cand) <= budget:
            tb = cand
            break
    # TODO(synk): for very long token counts N, add token tiling with a 1-token
    # halo so the (tb*N, ...) activation blocks stay VMEM-bounded.

    w1_flat = w1.reshape(3 * C_in, H)    # taps stacked along the contraction dim
    cost = pl.CostEstimate(
        flops=2 * B * N * 3 * (C_in * H + H * C_out),
        transcendentals=B * N * H,
        bytes_accessed=B * N * (C_in + C_out) * db + 3 * (C_in * H + H * C_out) * wb)

    return pl.pallas_call(
        functools.partial(_conv_mlp_kernel, approximate=approximate_gelu),
        out_shape=jax.ShapeDtypeStruct((B, N, C_out), x.dtype),
        grid_spec=pltpu.PrefetchScalarGridSpec(
            num_scalar_prefetch=0,
            grid=(B // tb, H // th),
            in_specs=[
                pl.BlockSpec((tb, N, C_in), lambda b, h: (b, 0, 0)),
                pl.BlockSpec((3 * C_in, th), lambda b, h: (0, h)),
                pl.BlockSpec((1, th), lambda b, h: (0, h)),
                pl.BlockSpec((3, th, C_out), lambda b, h: (0, h, 0)),
                pl.BlockSpec((1, C_out), lambda b, h: (0, 0)),
            ],
            out_specs=pl.BlockSpec((tb, N, C_out), lambda b, h: (b, 0, 0)),
            scratch_shapes=[pltpu.VMEM((tb, N, 3 * C_in), x.dtype),
                            pltpu.VMEM((tb * N, C_out), jnp.float32)],
        ),
        compiler_params=pltpu.CompilerParams(
            dimension_semantics=("parallel", "arbitrary"),
            vmem_limit_bytes=vmem_limit),
        cost_estimate=cost,
    )(x, w1_flat, b1, w2, b2)


# --------------------------------------------------------------------------
# Pure-JAX references (for correctness checking)
# --------------------------------------------------------------------------
def _ref_linear(x, w1, b1, w2, b2):
    h = jax.nn.gelu(x @ w1 + b1, approximate=False)
    return h @ w2 + b2


def _ref_conv1(x, w1, b1, w2, b2):
    def conv3(v, w, b):
        vp = jnp.pad(v, ((0, 0), (1, 1), (0, 0)))
        N = v.shape[1]
        return sum(vp[:, k:k + N] @ w[k] for k in range(3)) + b
    h = jax.nn.gelu(conv3(x, w1, b1), approximate=False)
    return conv3(h, w2, b2)


if __name__ == "__main__":
    key = jax.random.PRNGKey(0)
    B, N = 2, 8
    C_IN, HID, C_OUT = 32, 256, 32   # in_features, hidden_features, out_features

    ks = jax.random.split(key, 10)
    x = jax.random.normal(ks[0], (B, N, C_IN), dtype=jnp.float32)

    # ---- Linear-path parameters (use_conv1=False) ----
    w1 = jax.random.normal(ks[1], (C_IN, HID), dtype=jnp.float32) * (1.0 / math.sqrt(C_IN))
    b1 = jax.random.normal(ks[2], (1, HID), dtype=jnp.float32) * 0.02
    w2 = jax.random.normal(ks[3], (HID, C_OUT), dtype=jnp.float32) * (1.0 / math.sqrt(HID))
    b2 = jax.random.normal(ks[4], (1, C_OUT), dtype=jnp.float32) * 0.02

    y_ref = _ref_linear(x, w1, b1, w2, b2)

    # weights-resident variant
    y_res = jax.block_until_ready(mlp_linear(x, w1, b1, w2, b2))
    np.testing.assert_allclose(np.asarray(y_res), np.asarray(y_ref), rtol=1e-4, atol=1e-4)

    # hidden-chunked variant (forced, so both code paths are exercised)
    y_chk = jax.block_until_ready(
        mlp_linear(x, w1, b1, w2, b2, force_hidden_chunking=True, hidden_chunk_target=128))
    np.testing.assert_allclose(np.asarray(y_chk), np.asarray(y_ref), rtol=1e-4, atol=1e-4)

    # ---- Conv1d-path parameters (use_conv1=True), kernel_size=3, padding='same' ----
    cw1 = jax.random.normal(ks[5], (3, C_IN, HID), dtype=jnp.float32) * (1.0 / math.sqrt(3 * C_IN))
    cb1 = jax.random.normal(ks[6], (1, HID), dtype=jnp.float32) * 0.02
    cw2 = jax.random.normal(ks[7], (3, HID, C_OUT), dtype=jnp.float32) * (1.0 / math.sqrt(3 * HID))
    cb2 = jax.random.normal(ks[8], (1, C_OUT), dtype=jnp.float32) * 0.02

    y_conv = jax.block_until_ready(mlp_conv1(x, cw1, cb1, cw2, cb2))
    y_conv_ref = _ref_conv1(x, cw1, cb1, cw2, cb2)
    np.testing.assert_allclose(np.asarray(y_conv), np.asarray(y_conv_ref), rtol=1e-4, atol=1e-4)

    print("KERNEL_OK")
</pallas_src>

<mosaic_0001>
module attributes {stable_mosaic.version = 11 : i64} {
  func.func @_mlp_linear_resident_kernel(%arg0: i32, %arg1: memref<16x32xf32, #tpu.memory_space<vmem>>, %arg2: memref<32x256xf32, #tpu.memory_space<vmem>>, %arg3: memref<1x256xf32, #tpu.memory_space<vmem>>, %arg4: memref<256x32xf32, #tpu.memory_space<vmem>>, %arg5: memref<1x32xf32, #tpu.memory_space<vmem>>, %arg6: memref<16x32xf32, #tpu.memory_space<vmem>>) attributes {dimension_semantics = [#tpu.dimension_semantics<parallel>], iteration_bounds = array<i64: 1>, scalar_prefetch = 0 : i64, scratch_operands = 0 : i64, tpu.core_type = #tpu.core_type<tc>, window_params = [{transform_indices = @transform_0, window_bounds = array<i64: 16, 32>}, {pipeline_mode = #tpu.pipeline_mode<synchronous>, transform_indices = @transform_1, window_bounds = array<i64: 32, 256>}, {pipeline_mode = #tpu.pipeline_mode<synchronous>, transform_indices = @transform_2, window_bounds = array<i64: 1, 256>}, {pipeline_mode = #tpu.pipeline_mode<synchronous>, transform_indices = @transform_3, window_bounds = array<i64: 256, 32>}, {pipeline_mode = #tpu.pipeline_mode<synchronous>, transform_indices = @transform_4, window_bounds = array<i64: 1, 32>}, {transform_indices = @transform_5, window_bounds = array<i64: 16, 32>}]} {
    %c0 = arith.constant 0 : index
    %c0_0 = arith.constant 0 : index
    %0 = vector.load %arg1[%c0, %c0_0] : memref<16x32xf32, #tpu.memory_space<vmem>>, vector<16x32xf32>
    %c0_1 = arith.constant 0 : index
    %c0_2 = arith.constant 0 : index
    %1 = vector.load %arg2[%c0_1, %c0_2] : memref<32x256xf32, #tpu.memory_space<vmem>>, vector<32x256xf32>
    %cst = arith.constant dense<0.000000e+00> : vector<16x256xf32>
    %2 = tpu.matmul %0, %1, %cst {dimension_numbers = #tpu.dot_dimension_numbers<[1], [0], [0], [1], [0, 0, 1, 1], [], []>} : vector<16x32xf32>, vector<32x256xf32>, vector<16x256xf32> -> vector<16x256xf32>
    %c0_3 = arith.constant 0 : index
    %c0_4 = arith.constant 0 : index
    %3 = vector.load %arg3[%c0_3, %c0_4] : memref<1x256xf32, #tpu.memory_space<vmem>>, vector<1x256xf32>
    %4 = vector.broadcast %3 : vector<1x256xf32> to vector<16x256xf32>
    %5 = arith.addf %2, %4 : vector<16x256xf32>
    %cst_5 = arith.constant 5.000000e-01 : f32
    %6 = vector.broadcast %cst_5 : f32 to vector<16x256xf32>
    %7 = arith.mulf %6, %5 : vector<16x256xf32>
    %cst_6 = arith.constant 0.707106769 : f32
    %8 = vector.broadcast %cst_6 : f32 to vector<16x256xf32>
    %9 = arith.mulf %5, %8 : vector<16x256xf32>
    %10 = math.erf %9 : vector<16x256xf32>
    %cst_7 = arith.constant 1.000000e+00 : f32
    %11 = vector.broadcast %cst_7 : f32 to vector<16x256xf32>
    %12 = arith.addf %11, %10 : vector<16x256xf32>
    %13 = arith.mulf %7, %12 : vector<16x256xf32>
    %c0_8 = arith.constant 0 : index
    %c0_9 = arith.constant 0 : index
    %14 = vector.load %arg4[%c0_8, %c0_9] : memref<256x32xf32, #tpu.memory_space<vmem>>, vector<256x32xf32>
    %cst_10 = arith.constant dense<0.000000e+00> : vector<16x32xf32>
    %15 = tpu.matmul %13, %14, %cst_10 {dimension_numbers = #tpu.dot_dimension_numbers<[1], [0], [0], [1], [0, 0, 1, 1], [], []>} : vector<16x256xf32>, vector<256x32xf32>, vector<16x32xf32> -> vector<16x32xf32>
    %c0_11 = arith.constant 0 : index
    %c0_12 = arith.constant 0 : index
    %16 = vector.load %arg5[%c0_11, %c0_12] : memref<1x32xf32, #tpu.memory_space<vmem>>, vector<1x32xf32>
    %17 = vector.broadcast %16 : vector<1x32xf32> to vector<16x32xf32>
    %18 = arith.addf %15, %17 : vector<16x32xf32>
    %c0_13 = arith.constant 0 : index
    %c0_14 = arith.constant 0 : index
    %19 = vector.load %arg6[%c0_13, %c0_14] : memref<16x32xf32, #tpu.memory_space<vmem>>, vector<16x32xf32>
    tpu.vector_store %arg6[%c0_13, %c0_14], %18 {strides = array<i32>} : memref<16x32xf32, #tpu.memory_space<vmem>>, vector<16x32xf32>,
    return
  }
  func.func @transform_0(%arg0: i32) -> (i32, i32) {
    %c0_i32 = arith.constant 0 : i32
    %c0_i32_0 = arith.constant 0 : i32
    return %arg0, %c0_i32 : i32, i32
  }
  func.func @transform_1(%arg0: i32) -> (i32, i32) {
    %c0_i32 = arith.constant 0 : i32
    %c0_i32_0 = arith.constant 0 : i32
    %c0_i32_1 = arith.constant 0 : i32
    return %c0_i32, %c0_i32_0 : i32, i32
  }
  func.func @transform_2(%arg0: i32) -> (i32, i32) {
    %c0_i32 = arith.constant 0 : i32
    %c0_i32_0 = arith.constant 0 : i32
    %c0_i32_1 = arith.constant 0 : i32
    return %c0_i32, %c0_i32_0 : i32, i32
  }
  func.func @transform_3(%arg0: i32) -> (i32, i32) {
    %c0_i32 = arith.constant 0 : i32
    %c0_i32_0 = arith.constant 0 : i32
    %c0_i32_1 = arith.constant 0 : i32
    return %c0_i32, %c0_i32_0 : i32, i32
  }
  func.func @transform_4(%arg0: i32) -> (i32, i32) {
    %c0_i32 = arith.constant 0 : i32
    %c0_i32_0 = arith.constant 0 : i32
    %c0_i32_1 = arith.constant 0 : i32
    return %c0_i32, %c0_i32_0 : i32, i32
  }
  func.func @transform_5(%arg0: i32) -> (i32, i32) {
    %c0_i32 = arith.constant 0 : i32
    %c0_i32_0 = arith.constant 0 : i32
    return %arg0, %c0_i32 : i32, i32
  }
}

</mosaic_0001>

<bundles_post_ra>
// kernel: tpu_custom_call.1
= control target key start
LH: loop header
LB: loop body
LE: loop exit
PB: predicated region body
PF: predicated region fallthrough
CT: control target
= control target key end

     0   :  { %v396_v7 = vmov 0.0   ;;  %s578_s0 = inlined_call_operand.vmem [shape: f32[16,32], index: 0, kind: input, shape index: {}]   ;;  %s579_s1 = inlined_call_operand.vmem [shape: f32[32,256], index: 1, kind: input, shape index: {}]   ;;  %s580_s2 = inlined_call_operand.vmem [shape: f32[1,256], index: 2, kind: input, shape index: {}]   ;;  %s581_s3 = inlined_call_operand.vmem [shape: f32[256,32], index: 3, kind: input, shape index: {}]   ;;  %s582_s4 = inlined_call_operand.vmem [shape: f32[1,32], index: 4, kind: input, shape index: {}]   ;;  %s583_s5 = inlined_call_operand.hbm [shape: f32[16,32], index: 5, kind: output, shape index: {}]  }
   0x1   :  { %v24_v0 = vld [vmem:[%s579_s1 + $0x8] sm:$0xff]  ;;  %v26_v1 = vld [vmem:[%s579_s1 + $0x18] sm:$0xff]  ;;  %v23_v2 = vld [vmem:[%s579_s1] sm:$0xff]  ;;  %114 = vmatprep.mubr.f32.mxu0 %v396_v7 }
   0x2   :  { %v320_v3 = vpack.c.bf16 %v26_v1, %v24_v0  ;;  %v25_v4 = vld [vmem:[%s579_s1 + $0x10] sm:$0xff]  ;;  %v28_v5 = vld [vmem:[%s579_s1 + $0x28] sm:$0xff]  ;;  %v30_v6 = vld [vmem:[%s579_s1 + $0x38] sm:$0xff] }
   0x3   :  { %v322_v8 = vpack.c.bf16 %v25_v4, %v23_v2  ;;  %v324_v9 = vpack.c.bf16 %v30_v6, %v28_v5  ;;  %v27_v10 = vld [vmem:[%s579_s1 + $0x20] sm:$0xff]  ;;  %v29_v11 = vld [vmem:[%s579_s1 + $0x30] sm:$0xff]  ;;  %v164_v13 = vld [vmem:[%s581_s3 + $0x88] sm:$0xff] }
   0x4   :  { %321 = vmatprep.subr.bf16.mxu0 %v320_v3  ;;  %v163_v12 = vld [vmem:[%s581_s3 + $0x80] sm:$0xff]  ;;  %v326_v14 = vpack.c.bf16 %v29_v11, %v27_v10  ;;  %v148_v17 = vld [vmem:[%s581_s3 + $0x8] sm:$0xff]  ;;  %v165_v18 = vld [vmem:[%s581_s3 + $0x90] sm:$0xff] }
   0x5   :  { %323 = vmatpush1.bf16.msra.mxu0 %v322_v8  ;;  %v328_v15 = vpack.c.bf16 %v164_v13, %v163_v12  ;;  %v147_v16 = vld [vmem:[%s581_s3] sm:$0xff]  ;;  %v166_v20 = vld [vmem:[%s581_s3 + $0x98] sm:$0xff]  ;;  %v149_v21 = vld [vmem:[%s581_s3 + $0x10] sm:$0xff] }
   0x6   :  { %325 = vmatprep.subr.bf16.mxu0 %v324_v9  ;;  %v330_v19 = vpack.c.bf16 %v148_v17, %v147_v16  ;;  %v150_v22 = vld [vmem:[%s581_s3 + $0x18] sm:$0xff]  ;;  %v332_v23 = vpack.c.bf16 %v166_v20, %v165_v18  ;;  %v167_v24 = vld [vmem:[%s581_s3 + $0xa0] sm:$0xff]  ;;  %v168_v25 = vld [vmem:[%s581_s3 + $0xa8] sm:$0xff] }
   0x7   :  { %329 = vmatprep.subr.bf16.mxu1 %v328_v15  ;;  %v334_v26 = vpack.c.bf16 %v150_v22, %v149_v21 }
   0x8   :  { %331 = vmatpush3.bf16.msra.mxu1 %v330_v19 }
   0x9   :  { %10 = vsyncpa [#allocation3], 0  ;;  %327 = vmatpush1.bf16.msra.mxu0 %v326_v14  ;;  %v21_v27 = vld [vmem:[%s578_s0] sm:$0xff]  ;;  %vm43_vm0 = vcmask 261120   ;;  %333 = vmatprep.subr.bf16.mxu1 %v332_v23  ;;  %v336_v28 = vpack.c.bf16 %v168_v25, %v167_v24  ;;  %v152_v30 = vld [vmem:[%s581_s3 + $0x28] sm:$0xff]  ;;  %v33_v63 = vlaneseq  ;;  %s397_s24 = smov [#allocation2]  }
   0xa   :  { %v151_v29 = vld [vmem:[%s581_s3 + $0x20] sm:$0xff]  ;;  %v22_v32 = vld [vmem:[%s578_s0 + $0x8] sm:$0xff]  ;;  %v169_v33 = vld [vmem:[%s581_s3 + $0xb0] sm:$0xff]  ;;  %s268_s25 = sshll.u32 %s397_s24, 4  ;;  %s269_s25 = int_to_ptr.vmem [resolvable:$true] %s268_s25 }
   0xb   :  { %v338_v31 = vpack.c.bf16 %v152_v30, %v151_v29  ;;  %v170_v34 = vld [vmem:[%s581_s3 + $0xb8] sm:$0xff]  ;;  %v153_v36 = vld [vmem:[%s581_s3 + $0x30] sm:$0xff]  ;;  %v171_v39 = vld [vmem:[%s581_s3 + $0xc0] sm:$0xff]  ;;  %v34_v0 = vshrl.u32 %v33_v63, 7  ;;  %s372_s26 = scalar_lea.vmem %s269_s25, 256  ;;  %p377_p1 = scmp.lt.s32.totalorder %s269_s25, %s269_s25 }
   0xc   :  { %279 = vmatmul.mubr.msk.f32.vlgmr.msra.gmra.mrb[0].mxu0 %vm43_vm0, %v21_v27  ;;  %335 = vmatpush3.bf16.msra.mxu1 %v334_v26  ;;  %v340_v35 = vpack.c.bf16 %v170_v34, %v169_v33  ;;  %v154_v37 = vld [vmem:[%s581_s3 + $0x38] sm:$0xff]  ;;  %v172_v40 = vld [vmem:[%s581_s3 + $0xc8] sm:$0xff]  ;;  %v155_v42 = vld [vmem:[%s581_s3 + $0x40] sm:$0xff]  ;;  %p373_p0 = scmp.ne.s32.totalorder %s269_s25, %s372_s26  ;;  %p378_p2 = scmp.lt.s32.totalorder %s372_s26, %s372_s26 }
   0xd   :  { %120 = vmatprep.mubr.f32.mxu0 %v396_v7  ;;  %337 = vmatprep.subr.bf16.mxu1 %v336_v28  ;;  %v342_v38 = vpack.c.bf16 %v154_v37, %v153_v36  ;;  %v344_v41 = vpack.c.bf16 %v172_v40, %v171_v39  ;;  %v156_v43 = vld [vmem:[%s581_s3 + $0x48] sm:$0xff]  ;;  %v173_v45 = vld [vmem:[%s581_s3 + $0xd0] sm:$0xff]  ;;  %v174_v46 = vld [vmem:[%s581_s3 + $0xd8] sm:$0xff]  ;;  %v35_v1 = vsub.s32 0, %v34_v0  ;;  %v39_v3 = vsub.s32 1, %v34_v0 }
   0xe   :  { %v346_v44 = vpack.c.bf16 %v156_v43, %v155_v42  ;;  %v348_v47 = vpack.c.bf16 %v174_v46, %v173_v45  ;;  %v157_v48 = vld [vmem:[%s581_s3 + $0x50] sm:$0xff]  ;;  %v158_v49 = vld [vmem:[%s581_s3 + $0x58] sm:$0xff]  ;;  %v175_v51 = vld [vmem:[%s581_s3 + $0xe0] sm:$0xff]  ;;  %p379_p3 = por %p378_p2, %p377_p1 }
   0xf   :  { %v350_v50 = vpack.c.bf16 %v158_v49, %v157_v48  ;;  %v176_v52 = vld [vmem:[%s581_s3 + $0xe8] sm:$0xff]  ;;  %v159_v54 = vld [vmem:[%s581_s3 + $0x60] sm:$0xff]  ;;  %v177_v57 = vld [vmem:[%s581_s3 + $0xf0] sm:$0xff] }
  0x10   :  { %280 = vmatmul.mubr.msk.f32.gmra.mrb[2].mxu0 %vm43_vm0, %v22_v32  ;;  %339 = vmatpush3.bf16.msra.mxu1 %v338_v31  ;;  %v352_v53 = vpack.c.bf16 %v176_v52, %v175_v51  ;;  %v160_v55 = vld [vmem:[%s581_s3 + $0x68] sm:$0xff]  ;;  %v178_v58 = vld [vmem:[%s581_s3 + $0xf8] sm:$0xff]  ;;  %v161_v60 = vld [vmem:[%s581_s3 + $0x70] sm:$0xff]  ;;  %p380_p4 = pnand %p379_p3, %p373_p0 }
  0x11   :  { %341 = vmatprep.subr.bf16.mxu1 %v340_v35  ;;  %v354_v56 = vpack.c.bf16 %v160_v55, %v159_v54  ;;  %v356_v59 = vpack.c.bf16 %v178_v58, %v177_v57  ;;  %v162_v61 = vld [vmem:[%s581_s3 + $0x78] sm:$0xff]  ;;  %v31_v2 = vld [vmem:[%s580_s2] sm:$0x3] }
  0x12   :  { %v358_v62 = vpack.c.bf16 %v162_v61, %v161_v60  ;;  %v36_v4 = vrot.slane %v31_v2, %v35_v1  ;;  %v40_v5 = vrot.slane %v31_v2, %v39_v3  ;;  %v281_v35 = vld [vmem:[%s582_s4] ss:$0 sm:$0xff] }
  0x14   :  { %343 = vmatpush3.bf16.msra.mxu1 %v342_v38 }
  0x15   :  { %345 = vmatprep.subr.bf16.mxu1 %v344_v41 }
  0x18   :  { %347 = vmatpush3.bf16.msra.mxu1 %v346_v44 }
  0x19   :  { %349 = vmatprep.subr.bf16.mxu1 %v348_v47 }
  0x1c   :  { %351 = vmatpush3.bf16.msra.mxu1 %v350_v50 }
  0x1d   :  { %353 = vmatprep.subr.bf16.mxu1 %v352_v53 }
  0x20   :  { %355 = vmatpush3.bf16.msra.mxu1 %v354_v56 }
  0x21   :  { %357 = vmatprep.subr.bf16.mxu1 %v356_v59 }
  0x24   :  { %359 = vmatpush3.bf16.msra.mxu1 %v358_v62 }
  0xdf   :  { %v116_v6 = vpop.f32.mrb[0].mxu0 }
  0xe0   :  { %v117_v7 = vadd.f32 %v116_v6, %v36_v4  ;;  %v118_v8 = vpop.f32.mrb[1].mxu0 }
  0xe1   :  { %v119_v9 = vadd.f32 %v118_v8, %v40_v5 }
  0xe2   :  { %v131_v10 = vmul.f32 0.70710677, %v117_v7  ;;  %v127_v23 = vmul.f32 0.5, %v117_v7 }
  0xe3   :  { %v132_v11 = vmul.f32 0.70710677, %v119_v9  ;;  %v122_v12 = vpop.f32.mrb[2].mxu0  ;;  %v128_v21 = vmul.f32 0.5, %v119_v9 }
  0xe4   :  { %364 = verf.f32 %v131_v10  ;;  %v123_v13 = vadd.f32 %v122_v12, %v36_v4  ;;  %v124_v14 = vpop.f32.mrb[3].mxu0 }
  0xe5   :  { %366 = verf.f32 %v132_v11  ;;  %v125_v15 = vadd.f32 %v124_v14, %v40_v5 }
  0xe6   :  { %v133_v16 = vmul.f32 0.70710677, %v123_v13  ;;  %v129_v31 = vmul.f32 0.5, %v123_v13 }
  0xe7   :  { %v134_v17 = vmul.f32 0.70710677, %v125_v15  ;;  %v130_v29 = vmul.f32 0.5, %v125_v15 }
  0xe8   :  { %368 = verf.f32 %v133_v16 }
  0xe9   :  { %370 = verf.f32 %v134_v17 }
  0xee   :  { %v365_v18 = vpop.eup %364 }
  0xef   :  { %v367_v19 = vpop.eup %366  ;;  %v139_v20 = vadd.f32 1.0, %v365_v18 }
  0xf0   :  { %v140_v22 = vadd.f32 1.0, %v367_v19 }
  0xf1   :  { %v143_v28 = vmul.f32 %v139_v20, %v127_v23 }
  0xf2   :  { %v369_v24 = vpop.eup %368  ;;  %v144_v25 = vmul.f32 %v140_v22, %v128_v21 }
  0xf3   :  { %v371_v26 = vpop.eup %370  ;;  %v141_v27 = vadd.f32 1.0, %v369_v24 }
  0xf4   :  { %v142_v30 = vadd.f32 1.0, %v371_v26  ;;  %250 = vmatprep.mubr.f32.mxu1 %v144_v25 }
  0xf5   :  { %251 = vmatmul.mubr.f32.vlgmr.msra.gmra.mrb[0].mxu1 %v143_v28  ;;  %v145_v33 = vmul.f32 %v141_v27, %v129_v31 }
  0xf6   :  { %v146_v32 = vmul.f32 %v142_v30, %v130_v29 }
  0xf8   :  { %255 = vmatprep.mubr.f32.mxu1 %v146_v32 }
  0xf9   :  { %256 = vmatmul.mubr.f32.gmra.mrb[2].mxu1 %v145_v33 }
 0x1c8   :  { %v314_v34 = vpop.f32.mrb[0].mxu1 }
 0x1c9   :  { %v315_v36 = vpop.f32.mrb[1].mxu1 }
 0x1ca   :  { %v316_v37 = vadd.f32 %v315_v36, %v314_v34 }
 0x1cc   :  { %v253_v38 = vadd.f32 %v316_v37, %v281_v35  ;;  %v317_v39 = vpop.f32.mrb[2].mxu1 }
 0x1cd   :  { %v318_v40 = vpop.f32.mrb[3].mxu1 }
 0x1ce   :  { %261 = vst.msk [vmem:[#allocation2] sm:$0xff] %vm43_vm0, %v253_v38  ;;  %v319_v41 = vadd.f32 %v318_v40, %v317_v39 }
 0x1d0   :  { %v258_v42 = vadd.f32 %v319_v41, %v281_v35 }
 0x1d2   :  { %262 = vst.msk [vmem:[#allocation2 + $0x8] sm:$0xff] %vm43_vm0, %v258_v42 }
 0x1d3   :  { %383 = shalt.err (!%p380_p4)
}
 0x1d4   :  { %s384_s28 = scalar_lea.hbm %s583_s5, 256 }
 0x1d5   :  { %p385_p5 = scmp.ne.s32.totalorder %s583_s5, %s384_s28  ;;  %p388_p6 = scmp.lt.u32.totalorder %s384_s28, %s583_s5 }
 0x1d7   :  { %p390_p7 = pnand %p388_p6, %p385_p5 }
 0x1d9   :  { %393 = shalt.err (!%p390_p7)
}
 0x1da   :  { %s398_s8 = smov 128   ;;  %s399_s9 = smov 8  }
 0x1db   :  { %274 = dma.vmem_to_hbm [thread:$0]  %s269_s25, 256, %s583_s5, [#allocation3], %s398_s8, %s398_s8, %s399_s9  }
 0x1dc   :  { %394 = dma.done.wait [#allocation3], 256  }
 0x1dd   :  { %395 = vsyncadd [#allocation3], 4294967040 }
 0x1de   :  { %278 = vsyncpa [#allocation3], 1 }

</bundles_post_ra>
